<compile_context>
chip_gen: v6e
topology: v6e:2x2x1
jax: 0.10.0
libtpu: 0.0.40
codegen_flags: <defaults>
</compile_context>

<pallas_src>
import functools

import jax
import jax.numpy as jnp
from jax.experimental import pallas as pl
from jax.experimental.pallas import tpu as pltpu

NEG_SLOPE = 0.01   # nn.LeakyReLU default
BN_EPS = 1e-5      # nn.BatchNorm3d default


def _attention_kernel(x_ref, w_ref, bias_ref, *out_refs, return_attention):
    # x_ref   : (1, Cin, TS)   channels on sublanes, spatial tile on lanes
    # w_ref   : (2*Cout, Cin)  rows [0:Cout]=feature conv, [Cout:]=BN-folded attention conv
    # bias_ref: (Cout, 1)      folded eval-mode BatchNorm bias
    x = x_ref[0].astype(jnp.float32)                      # (Cin, TS)
    w = w_ref[...]                                        # (2*Cout, Cin)
    cin = x.shape[0]
    cout = w.shape[0] // 2

    # Both 1x1x1 convs as unrolled VPU FMAs (avoid padded degenerate MXU matmul):
    #   acc[o, s] = sum_c w[o, c] * x[c, s]
    acc = w[:, 0:1] * x[0:1, :]                           # (2*Cout, TS)
    for c in range(1, cin):
        acc = acc + w[:, c:c + 1] * x[c:c + 1, :]

    feats = acc[:cout, :]                                 # feature branch: Conv3d(1x1x1, no bias)
    a = acc[cout:, :] + bias_ref[...]                     # attn conv -> MaxPool(1,1,0)=id -> eval BN
    a = jnp.where(a >= 0, a, NEG_SLOPE * a)               # LeakyReLU
    # Dropout(0.1) is identity in eval mode (enforced in the wrapper).

    # softmax over channels (sublane axis 0) — F.softmax on 5-D input defaults to dim=1
    m = jnp.max(a, axis=0, keepdims=True)
    e = jnp.exp(a - m)
    # NOTE: exact reciprocal kept so the 1e-5 allclose tolerance against the reference holds.
    att = e * pl.reciprocal(jnp.sum(e, axis=0, keepdims=True), approx=False)

    out = feats * att
    if return_attention:
        att_ref, out_ref = out_refs
        att_ref[0] = att.astype(att_ref.dtype)
        out_ref[0] = out.astype(out_ref.dtype)
    else:
        (out_ref,) = out_refs
        out_ref[0] = out.astype(out_ref.dtype)


def _pick_spatial_tile(dhw, n_batch, max_tile, min_programs):
    """Largest multiple of 128 dividing dhw, <= max_tile, yielding >= min_programs programs."""
    best = 0
    t = 128
    lim = min(dhw, max_tile)
    while t <= lim:
        if dhw % t == 0:
            best = t
        t += 128
    assert best > 0, "D*H*W must be divisible by a multiple of 128 for this kernel"
    # Keep both v7x TensorCores fed: require >= min_programs grid programs when possible.
    while n_batch * (dhw // best) < min_programs:
        nxt = 0
        t = best - 128
        while t >= 128:
            if dhw % t == 0:
                nxt = t
                break
            t -= 128
        if nxt == 0:
            break
        best = nxt
    return best


def attention_module(x_ncdhw, w_feat, w_att, gamma, beta, run_mean, run_var,
                     *, return_attention=True, out_dtype=jnp.float32,
                     max_tile=16 * 1024, min_programs=2, training=False):
    """x_ncdhw: (N, Cin, D, H, W) float32.

    Returns (att, out) if return_attention else out, each (N, Cout, D, H, W) in out_dtype.
    """
    if training:
        # TODO(synk): training-mode Dropout(p=0.1) RNG path not implemented; eval mode only.
        raise NotImplementedError("AttentionModule Pallas kernel matches eval mode only "
                                  "(Dropout is treated as identity).")

    N, Cin, D, H, W = x_ncdhw.shape
    Cout = w_feat.shape[0]
    DHW = D * H * W
    assert DHW % 128 == 0, "pad spatial extent (D*H*W) to a multiple of 128 for this kernel"

    # Free reshape (no transpose): channels stay on the second axis (sublanes).
    x3d = x_ncdhw.reshape(N, Cin, DHW)

    tile_sp = _pick_spatial_tile(DHW, N, max_tile, min_programs)
    n_tiles = DHW // tile_sp
    grid = (N, n_tiles)                                   # both axes fully parallel

    # Conv3d weights (Cout, Cin, 1, 1, 1) -> (Cout, Cin)
    wf = w_feat.reshape(Cout, Cin).astype(jnp.float32)
    wa = w_att.reshape(Cout, Cin).astype(jnp.float32)

    # Fold eval-mode BatchNorm: scale goes into the attention conv weight, bias stays.
    scale = gamma / jnp.sqrt(run_var + BN_EPS)            # (Cout,)
    wa_folded = wa * scale[:, None]                       # (Cout, Cin)
    bias = (beta - run_mean * scale).reshape(Cout, 1).astype(jnp.float32)

    # Single weight slab: rows [0:Cout] feature conv, [Cout:2*Cout] folded attention conv.
    w_cat = jnp.concatenate([wf, wa_folded], axis=0)      # (2*Cout, Cin)

    out_dtype = jnp.dtype(out_dtype)
    n_out = 2 if return_attention else 1

    # Per-step VMEM estimate: double-buffered x + output blocks, plus generous headroom
    # for the (2*Cout, TS) f32 intermediates.  Floor 32 MiB (>= defaults everywhere,
    # raises v5e's 16 MiB scoped default), cap 64 MiB (v7x physical VMEM).
    vmem_needed = (2 * Cin * 4
                   + 2 * n_out * Cout * out_dtype.itemsize
                   + 8 * (2 * Cout) * 4) * tile_sp
    vmem_limit = int(min(64 * 2**20, max(vmem_needed, 32 * 2**20)))

    blk_out = pl.BlockSpec((1, Cout, tile_sp), lambda n, j: (n, 0, j))
    out_shape_one = jax.ShapeDtypeStruct((N, Cout, DHW), out_dtype)
    if return_attention:
        out_shape = (out_shape_one, out_shape_one)
        out_specs = [blk_out, blk_out]
    else:
        out_shape = out_shape_one
        out_specs = blk_out

    kernel = functools.partial(_attention_kernel, return_attention=return_attention)

    result = pl.pallas_call(
        kernel,
        out_shape=out_shape,
        grid_spec=pltpu.PrefetchScalarGridSpec(
            num_scalar_prefetch=0,
            grid=grid,
            in_specs=[
                pl.BlockSpec((1, Cin, tile_sp), lambda n, j: (n, 0, j)),
                pl.BlockSpec((2 * Cout, Cin), lambda n, j: (0, 0)),   # resident
                pl.BlockSpec((Cout, 1), lambda n, j: (0, 0)),         # resident
            ],
            out_specs=out_specs,
        ),
        compiler_params=pltpu.CompilerParams(
            dimension_semantics=("parallel", "parallel"),
            vmem_limit_bytes=vmem_limit),
    )(x3d, w_cat, bias)

    # Free reshapes back to NCDHW (no transpose needed in this layout).
    if return_attention:
        att3d, out3d = result
        return (att3d.reshape(N, Cout, D, H, W),
                out3d.reshape(N, Cout, D, H, W))
    return result.reshape(N, Cout, D, H, W)


def _reference(x_ncdhw, w_feat, w_att, gamma, beta, run_mean, run_var):
    N, Cin, D, H, W = x_ncdhw.shape
    Cout = w_feat.shape[0]
    x2d = jnp.transpose(x_ncdhw, (0, 2, 3, 4, 1)).reshape(-1, Cin)
    feats = x2d @ w_feat.reshape(Cout, Cin).T
    a = x2d @ w_att.reshape(Cout, Cin).T
    a = (a - run_mean) / jnp.sqrt(run_var + BN_EPS) * gamma + beta
    a = jnp.where(a >= 0, a, NEG_SLOPE * a)
    att = jax.nn.softmax(a, axis=-1)
    out = feats * att

    def to_ncdhw(y):
        return jnp.transpose(y.reshape(N, D, H, W, Cout), (0, 4, 1, 2, 3))

    return to_ncdhw(att), to_ncdhw(out)


if __name__ == "__main__":
    key = jax.random.PRNGKey(0)
    k_x, k_wf, k_wa = jax.random.split(key, 3)

    # Small shapes consistent with the module: N=2, Cin=4, Cout=8, D=4, H=16, W=16 (DHW=1024)
    N, Cin, Cout, D, H, W = 2, 4, 8, 4, 16, 16
    x = jax.random.normal(k_x, (N, Cin, D, H, W), dtype=jnp.float32)

    # Deterministic synthetic parameters (shapes from __init__)
    w_feat = jax.random.normal(k_wf, (Cout, Cin, 1, 1, 1), dtype=jnp.float32) * 0.3
    w_att = jax.random.normal(k_wa, (Cout, Cin, 1, 1, 1), dtype=jnp.float32) * 0.3
    gamma = 1.0 + 0.1 * jnp.arange(Cout, dtype=jnp.float32)
    beta = 0.05 * jnp.arange(Cout, dtype=jnp.float32)
    run_mean = 0.02 * jnp.arange(Cout, dtype=jnp.float32)
    run_var = 1.0 + 0.03 * jnp.arange(Cout, dtype=jnp.float32)

    att_ref, out_ref = _reference(x, w_feat, w_att, gamma, beta, run_mean, run_var)

    # 1) Default path: auto-picked largest tile (tile_sp = DHW = 1024 here, grid (2, 1)).
    att, out = attention_module(x, w_feat, w_att, gamma, beta, run_mean, run_var)
    jax.block_until_ready((att, out))
    assert jnp.allclose(att, att_ref, atol=1e-5, rtol=1e-5)
    assert jnp.allclose(out, out_ref, atol=1e-5, rtol=1e-5)

    # 2) Multi-tile path: smaller max_tile forces tile_sp=256, grid (2, 4).
    att2, out2 = attention_module(x, w_feat, w_att, gamma, beta, run_mean, run_var,
                                  max_tile=256)
    assert jnp.allclose(att2, att_ref, atol=1e-5, rtol=1e-5)
    assert jnp.allclose(out2, out_ref, atol=1e-5, rtol=1e-5)

    # 3) out-only path: elides the `att` HBM stores (~40% less write traffic).
    out3 = attention_module(x, w_feat, w_att, gamma, beta, run_mean, run_var,
                            return_attention=False)
    assert jnp.allclose(out3, out_ref, atol=1e-5, rtol=1e-5)

    # 4) bf16-output path: halves output write bytes; looser tolerance by construction.
    att4, out4 = attention_module(x, w_feat, w_att, gamma, beta, run_mean, run_var,
                                  out_dtype=jnp.bfloat16)
    assert jnp.allclose(att4.astype(jnp.float32), att_ref, atol=5e-2, rtol=5e-2)
    assert jnp.allclose(out4.astype(jnp.float32), out_ref, atol=5e-2, rtol=5e-2)

    jax.block_until_ready((att2, out2, out3, att4, out4))
    print("KERNEL_OK")
</pallas_src>

<mosaic_0001>
module attributes {stable_mosaic.version = 11 : i64} {
  func.func @_attention_kernel(%arg0: i32, %arg1: i32, %arg2: memref<1x4x1024xf32, #tpu.memory_space<vmem>>, %arg3: memref<16x4xf32, #tpu.memory_space<vmem>>, %arg4: memref<8x1xf32, #tpu.memory_space<vmem>>, %arg5: memref<1x8x1024xf32, #tpu.memory_space<vmem>>, %arg6: memref<1x8x1024xf32, #tpu.memory_space<vmem>>) attributes {dimension_semantics = [#tpu.dimension_semantics<parallel>, #tpu.dimension_semantics<parallel>], iteration_bounds = array<i64: 2, 1>, scalar_prefetch = 0 : i64, scratch_operands = 0 : i64, tpu.core_type = #tpu.core_type<tc>, window_params = [{transform_indices = @transform_0, window_bounds = array<i64: 1, 4, 1024>}, {pipeline_mode = #tpu.pipeline_mode<synchronous>, transform_indices = @transform_1, window_bounds = array<i64: 16, 4>}, {pipeline_mode = #tpu.pipeline_mode<synchronous>, transform_indices = @transform_2, window_bounds = array<i64: 8, 1>}, {transform_indices = @transform_3, window_bounds = array<i64: 1, 8, 1024>}, {transform_indices = @transform_4, window_bounds = array<i64: 1, 8, 1024>}]} {
    %c0 = arith.constant 0 : index
    %c0_0 = arith.constant 0 : index
    %c0_1 = arith.constant 0 : index
    %0 = vector.load %arg2[%c0, %c0_0, %c0_1] : memref<1x4x1024xf32, #tpu.memory_space<vmem>>, vector<1x4x1024xf32>
    %1 = vector.shape_cast %0 : vector<1x4x1024xf32> to vector<4x1024xf32>
    %c0_2 = arith.constant 0 : index
    %c0_3 = arith.constant 0 : index
    %2 = vector.load %arg3[%c0_2, %c0_3] : memref<16x4xf32, #tpu.memory_space<vmem>>, vector<16x4xf32>
    %3 = vector.extract_strided_slice %2 {offsets = [0, 0], sizes = [16, 1], strides = [1, 1]} : vector<16x4xf32> to vector<16x1xf32>
    %4 = vector.extract_strided_slice %1 {offsets = [0, 0], sizes = [1, 1024], strides = [1, 1]} : vector<4x1024xf32> to vector<1x1024xf32>
    %5 = vector.broadcast %3 : vector<16x1xf32> to vector<16x1024xf32>
    %6 = vector.broadcast %4 : vector<1x1024xf32> to vector<16x1024xf32>
    %7 = arith.mulf %5, %6 : vector<16x1024xf32>
    %8 = vector.extract_strided_slice %2 {offsets = [0, 1], sizes = [16, 1], strides = [1, 1]} : vector<16x4xf32> to vector<16x1xf32>
    %9 = vector.extract_strided_slice %1 {offsets = [1, 0], sizes = [1, 1024], strides = [1, 1]} : vector<4x1024xf32> to vector<1x1024xf32>
    %10 = vector.broadcast %8 : vector<16x1xf32> to vector<16x1024xf32>
    %11 = vector.broadcast %9 : vector<1x1024xf32> to vector<16x1024xf32>
    %12 = arith.mulf %10, %11 : vector<16x1024xf32>
    %13 = arith.addf %7, %12 : vector<16x1024xf32>
    %14 = vector.extract_strided_slice %2 {offsets = [0, 2], sizes = [16, 1], strides = [1, 1]} : vector<16x4xf32> to vector<16x1xf32>
    %15 = vector.extract_strided_slice %1 {offsets = [2, 0], sizes = [1, 1024], strides = [1, 1]} : vector<4x1024xf32> to vector<1x1024xf32>
    %16 = vector.broadcast %14 : vector<16x1xf32> to vector<16x1024xf32>
    %17 = vector.broadcast %15 : vector<1x1024xf32> to vector<16x1024xf32>
    %18 = arith.mulf %16, %17 : vector<16x1024xf32>
    %19 = arith.addf %13, %18 : vector<16x1024xf32>
    %20 = vector.extract_strided_slice %2 {offsets = [0, 3], sizes = [16, 1], strides = [1, 1]} : vector<16x4xf32> to vector<16x1xf32>
    %21 = vector.extract_strided_slice %1 {offsets = [3, 0], sizes = [1, 1024], strides = [1, 1]} : vector<4x1024xf32> to vector<1x1024xf32>
    %22 = vector.broadcast %20 : vector<16x1xf32> to vector<16x1024xf32>
    %23 = vector.broadcast %21 : vector<1x1024xf32> to vector<16x1024xf32>
    %24 = arith.mulf %22, %23 : vector<16x1024xf32>
    %25 = arith.addf %19, %24 : vector<16x1024xf32>
    %26 = vector.extract_strided_slice %25 {offsets = [0, 0], sizes = [8, 1024], strides = [1, 1]} : vector<16x1024xf32> to vector<8x1024xf32>
    %27 = vector.extract_strided_slice %25 {offsets = [8, 0], sizes = [8, 1024], strides = [1, 1]} : vector<16x1024xf32> to vector<8x1024xf32>
    %c0_4 = arith.constant 0 : index
    %c0_5 = arith.constant 0 : index
    %28 = vector.load %arg4[%c0_4, %c0_5] : memref<8x1xf32, #tpu.memory_space<vmem>>, vector<8x1xf32>
    %29 = vector.broadcast %28 : vector<8x1xf32> to vector<8x1024xf32>
    %30 = arith.addf %27, %29 : vector<8x1024xf32>
    %cst = arith.constant 0.000000e+00 : f32
    %31 = vector.broadcast %cst : f32 to vector<8x1024xf32>
    %32 = arith.cmpf oge, %30, %31 : vector<8x1024xf32>
    %cst_6 = arith.constant 0.00999999977 : f32
    %33 = vector.broadcast %cst_6 : f32 to vector<8x1024xf32>
    %34 = arith.mulf %33, %30 : vector<8x1024xf32>
    %35 = arith.select %32, %30, %34 : vector<8x1024xi1>, vector<8x1024xf32>
    %cst_7 = arith.constant dense<0xFF800000> : vector<1024xf32>
    %36 = vector.multi_reduction <maximumf>, %35, %cst_7 [0] : vector<8x1024xf32> to vector<1024xf32>
    %37 = vector.shape_cast %36 : vector<1024xf32> to vector<1x1024xf32>
    %38 = vector.broadcast %37 : vector<1x1024xf32> to vector<8x1024xf32>
    %39 = arith.subf %35, %38 : vector<8x1024xf32>
    %40 = math.exp %39 : vector<8x1024xf32>
    %cst_8 = arith.constant dense<0.000000e+00> : vector<1024xf32>
    %41 = vector.multi_reduction <add>, %40, %cst_8 [0] : vector<8x1024xf32> to vector<1024xf32>
    %42 = vector.shape_cast %41 : vector<1024xf32> to vector<1x1024xf32>
    %43 = tpu.reciprocal %42 : vector<1x1024xf32> -> vector<1x1024xf32>
    %44 = vector.broadcast %43 : vector<1x1024xf32> to vector<8x1024xf32>
    %45 = arith.mulf %40, %44 : vector<8x1024xf32>
    %46 = arith.mulf %26, %45 : vector<8x1024xf32>
    %c0_9 = arith.constant 0 : index
    %c0_10 = arith.constant 0 : index
    %c0_11 = arith.constant 0 : index
    %47 = vector.load %arg5[%c0_9, %c0_10, %c0_11] : memref<1x8x1024xf32, #tpu.memory_space<vmem>>, vector<1x8x1024xf32>
    %48 = vector.shape_cast %47 : vector<1x8x1024xf32> to vector<8x1024xf32>
    %49 = vector.shape_cast %45 : vector<8x1024xf32> to vector<1x8x1024xf32>
    tpu.vector_store %arg5[%c0_9, %c0_10, %c0_11], %49 {strides = array<i32>} : memref<1x8x1024xf32, #tpu.memory_space<vmem>>, vector<1x8x1024xf32>,
    %c0_12 = arith.constant 0 : index
    %c0_13 = arith.constant 0 : index
    %c0_14 = arith.constant 0 : index
    %50 = vector.load %arg6[%c0_12, %c0_13, %c0_14] : memref<1x8x1024xf32, #tpu.memory_space<vmem>>, vector<1x8x1024xf32>
    %51 = vector.shape_cast %50 : vector<1x8x1024xf32> to vector<8x1024xf32>
    %52 = vector.shape_cast %46 : vector<8x1024xf32> to vector<1x8x1024xf32>
    tpu.vector_store %arg6[%c0_12, %c0_13, %c0_14], %52 {strides = array<i32>} : memref<1x8x1024xf32, #tpu.memory_space<vmem>>, vector<1x8x1024xf32>,
    return
  }
  func.func @transform_0(%arg0: i32, %arg1: i32) -> (i32, i32, i32) {
    %c0_i32 = arith.constant 0 : i32
    %c0_i32_0 = arith.constant 0 : i32
    return %arg0, %c0_i32, %arg1 : i32, i32, i32
  }
  func.func @transform_1(%arg0: i32, %arg1: i32) -> (i32, i32) {
    %c0_i32 = arith.constant 0 : i32
    %c0_i32_0 = arith.constant 0 : i32
    %c0_i32_1 = arith.constant 0 : i32
    return %c0_i32, %c0_i32_0 : i32, i32
  }
  func.func @transform_2(%arg0: i32, %arg1: i32) -> (i32, i32) {
    %c0_i32 = arith.constant 0 : i32
    %c0_i32_0 = arith.constant 0 : i32
    %c0_i32_1 = arith.constant 0 : i32
    return %c0_i32, %c0_i32_0 : i32, i32
  }
  func.func @transform_3(%arg0: i32, %arg1: i32) -> (i32, i32, i32) {
    %c0_i32 = arith.constant 0 : i32
    %c0_i32_0 = arith.constant 0 : i32
    return %arg0, %c0_i32, %arg1 : i32, i32, i32
  }
  func.func @transform_4(%arg0: i32, %arg1: i32) -> (i32, i32, i32) {
    %c0_i32 = arith.constant 0 : i32
    %c0_i32_0 = arith.constant 0 : i32
    return %arg0, %c0_i32, %arg1 : i32, i32, i32
  }
}

</mosaic_0001>

<bundles_post_ra>
// kernel: tpu_custom_call.1
= control target key start
LH: loop header
LB: loop body
LE: loop exit
PB: predicated region body
PF: predicated region fallthrough
CT: control target
= control target key end

     0   :  { %10 = vsyncpa [#allocation3], 0  ;;  %s1880_s0 = inlined_call_operand.hbm [shape: f32[2,4,1024], index: 0, kind: input, shape index: {}]   ;;  %s1881_s1 = inlined_call_operand.vmem [shape: f32[16,4], index: 1, kind: input, shape index: {}]   ;;  %s1882_s2 = inlined_call_operand.vmem [shape: f32[8,1], index: 2, kind: input, shape index: {}]   ;;  %s1883_s3 = inlined_call_operand.hbm [shape: f32[2,8,1024], index: 3, kind: output, shape index: {0}]   ;;  %s1884_s4 = inlined_call_operand.hbm [shape: f32[2,8,1024], index: 4, kind: output, shape index: {1}]  }
   0x1   :  { %12 = vsyncpa [#allocation3 + $0x1], 0 }
   0x2   :  { %13 = vsyncpa [#allocation4], 0 }
   0x3   :  { %15 = vsyncpa [#allocation4 + $0x1], 0 }
   0x4   :  { %16 = vsyncpa [#allocation7], 0 }
   0x5   :  { %18 = vsyncpa [#allocation7 + $0x1], 0  ;;  %s1354_s15 = smov 0   ;;  %s1356_s16 = smov 0  }
   0x6   :  { %s1358_s17 = smov 0   ;;  %s1360_s18 = smov 0  }
   0x7   :  { %s1362_s19 = smov 0   ;;  %s1364_s20 = smov 0  }
   0x8 LB: > { %s1047_s21 = sadd.s32 4294967295, %s1320_s20   ;;  %s1048_s22 = sadd.s32 4294967294, %s1320_s20   ;;  %s1320_s20 = sphi %s1364_s20, %s24_s20   ;;  %s1316_s19 = sphi %s1362_s19, %s1920_s19   ;;  %s1312_s18 = sphi %s1360_s18, %s1919_s18   ;;  %s1308_s17 = sphi %s1358_s17, %s1918_s17   ;;  %s1304_s16 = sphi %s1356_s16, %s1917_s16   ;;  %s1300_s15 = sphi %s1354_s15, %s1916_s15  }
   0x9   : > { %s36_s23 = sadd.s32 1, %s1316_s19  ;;  %s45_s24 = sadd.s32 1, %s1308_s17 }
   0xa   : > { %p38_p0 = scmp.ge.s32.totalorder %s36_s23, 2  ;;  %p52_p1 = scmp.ne.s32.totalorder %s1308_s17, %s1304_s16 }
   0xb   : > { %p53_p2 = scmp.eq.s32.totalorder %s1320_s20, 0  ;;  %p58_p3 = scmp.ne.s32.totalorder %s1304_s16, %s1300_s15 }
   0xc   : > { %s1922_s23 = smov (%p38_p0, %s36_s23), 0  ;;  %p59_p5 = scmp.eq.s32.totalorder %s1047_s21, 0 }
   0xd   : > { %p1395_p4 = por %p53_p2, %p52_p1  ;;  %s40_s26 = ssub.s32 %s1316_s19, %s1922_s23 }
   0xe   : > { %p126_p6 = scmp.eq.s32.totalorder %s1047_s21, 1  ;;  %p43_p7 = scmp.eq.s32.totalorder %s40_s26, 0 }
   0xf   : > { %p1401_p8 = por %p59_p5, %p58_p3  ;;  %p132_p10 = scmp.eq.s32.totalorder %s1048_s22, 1 }
  0x10   : > { %p1405_p9 = por %p126_p6, %p52_p1  ;;  %p1086_p13 = scmp.lt.s32.totalorder %s1320_s20, 2 }
  0x11   : > { %s1410_s29 = scalar_select %p43_p7, %s1308_s17, %s45_s24  }
  0x12   : > { %p1412_p11 = por %p132_p10, %p58_p3  ;;  %s186_s5 = sand.u32 1, %s1308_s17  }
  0x13   : > { %s1051_s6 = sshll.u32 %s186_s5, 5  ;;  %s1066_s7 = sshll.u32 %s1316_s19, 9 }
  0x14   : > { %s1896_s30 = scalar_select %p1412_p11, 1, 0 }
  0x15   : > { %s198_s10 = scalar_lea.hbm %s1880_s0, %s1066_s7  ;;  %s190_s11 = scalar_lea.vmem [#allocation2], %s1051_s6 }
  0x16   : > { %s200_s12 = sshll.u32 %s190_s11, 4  ;;  %p1425_p0 = pnand %p1086_p13, %p1395_p4  ;;  %s201_s12 = int_to_ptr.vmem [resolvable:$true] %s200_s12 }
  0x17   : > { %p1054_p1 = scmp.ge.s32.totalorder %s1320_s20, 1  ;;  %p205_p2 = scmp.lt.s32.totalorder %s1320_s20, 3 }
  0x18   : > { %s187_s14 = scalar_lea.sflag [#allocation3], %s186_s5  ;;  %p1184_p3 = pneg %p1425_p0 }
  0x19   : > { %s1195_s21 = scalar_lea.vmem %s201_s12, 512  ;;  %s1322_s22 = smov [#allocation2]  }
  0x1a   : > { %p1196_p5 = scmp.ne.s32.totalorder %s201_s12, %s1195_s21  ;;  %s1200_s24 = sshll.u32 %s1322_s22, 4  ;;  %s1201_s24 = int_to_ptr.vmem [resolvable:$false] %s1200_s24 }
  0x1b   : > { %s1202_s26 = scalar_lea.vmem %s1201_s24, 1024  ;;  %p1203_p10 = scmp.lt.s32.totalorder %s201_s12, %s1201_s24 }
  0x1c   : > { %p1198_p6 = pnand %p1196_p5, %p1184_p3  ;;  %p1204_p12 = scmp.lt.s32.totalorder %s1202_s26, %s1195_s21 }
  0x1e   : > { %p1199_p7 = pneg %p1198_p6  ;;  %p1205_p4 = por %p1204_p12, %p1203_p10 }
  0x20   : > { %p1206_p13 = pnand %p1205_p4, %p1199_p7 }
  0x22   : > { %1209 = shalt.err (!%p1206_p13)
}
  0x23   : > { %1078 = dma.hbm_to_vmem [thread:$0]  (!%p1425_p0), %s198_s10, 512, %s201_s12, %s187_s14  }
  0x24   : > { %p206_p11 = pnand %p1054_p1, %p205_p2 }
  0x26   : > { %209 = sbr.rel (%p206_p11) target bundleno = 311 (0x137), region = 32 }
  0x2b   : > { %s1440_s25 = sand.u32 1, %s1304_s16  }
  0x2c   : > { %s1055_s5 = sshll.u32 %s1440_s25, 5  ;;  %s212_s6 = scalar_lea.sflag [#allocation3], %s1440_s25 }
  0x2d   : > { %s1444_s7 = scalar_lea.vmem [#allocation2], %s1055_s5 }
  0x2e   : > { %1287 = dma.done.wait (%p1401_p8), %s212_s6, 512  }
  0x2f   : > { %1289 = vsyncadd (%p1401_p8), %s212_s6, 4294966784  ;;  %v1323_v0 = vmov 0   ;;  %v1324_v1 = vmov 2   ;;  %v253_v2 = vld [vmem:[%s1881_s1 + $0x8] sm:$0xff]  ;;  %v1325_v3 = vmov 1   ;;  %v1326_v4 = vmov 3  }
  0x30   : > { %1140 = vset.pattern.permute.xlu0 %v1323_v0  ;;  %1142 = vset.pattern.permute.xlu1 %v1324_v1  ;;  %v692_v5 = vld [vmem:[%s1882_s2] sm:$0xff]  ;;  %v268_v7 = vlaneseq  ;;  %v1463_v12 = vld [vmem:[%s1444_s7 + $0x8] sm:$0xff]  ;;  %v1466_v13 = vld [vmem:[%s1444_s7 + $0x10] sm:$0xff]  ;;  %s1056_s13 = sshll.u32 %s1440_s25, 6  ;;  %s1067_s22 = sshll.u32 %s1312_s18, 10 }
  0x31   : > { %261 = vperm.xlu0 %1140, %v253_v2   ;;  %473 = vperm.xlu1 %1142, %v253_v2   ;;  %v252_v6 = vld [vmem:[%s1881_s1] sm:$0xff]  ;;  %v1471_v16 = vld [vmem:[%s1444_s7 + $0x18] sm:$0xff]  ;;  %s1766_s14 = scalar_lea.vmem [#allocation5], %s1056_s13  ;;  %s1775_s21 = scalar_lea.vmem [#allocation6], %s1056_s13 }
  0x32   : > { %v269_v8 = vshrl.u32 %v268_v7, 7  ;;  %v1460_v11 = vld [vmem:[%s1444_s7] sm:$0xff]  ;;  %s912_s24 = sshll.u32 %s1766_s14, 4  ;;  %s928_s18 = sshll.u32 %s1775_s21, 4  ;;  %s1798_s24 = int_to_ptr.vmem [resolvable:$true] %s912_s24  ;;  %s1811_s18 = int_to_ptr.vmem [resolvable:$true] %s928_s18 }
  0x33   : > { %s1796_s6 = scalar_lea.hbm %s1883_s3, %s1067_s22  ;;  %s1809_s9 = scalar_lea.hbm %s1884_s4, %s1067_s22 }
  0x34   : > { %v270_v9 = vsub.s32 0, %v269_v8  ;;  %v274_v10 = vsub.s32 4, %v269_v8  ;;  %v366_v17 = vsub.s32 1, %v269_v8  ;;  %v370_v18 = vsub.s32 5, %v269_v8  ;;  %s891_s10 = scalar_lea.sflag [#allocation4], %s1440_s25  ;;  %s1210_s11 = scalar_lea.vmem %s1798_s24, 1024 }
  0x35   : > { %1141 = vset.pattern.permute.xlu0 %v1325_v3  ;;  %1143 = vset.pattern.permute.xlu1 %v1326_v4  ;;  %v478_v19 = vsub.s32 2, %v269_v8  ;;  %v482_v20 = vsub.s32 6, %v269_v8  ;;  %v590_v43 = vsub.s32 3, %v269_v8  ;;  %v594_v44 = vsub.s32 7, %v269_v8  ;;  %p1211_p8 = scmp.ne.s32.totalorder %s1798_s24, %s1210_s11  ;;  %s1327_s27 = smov [#allocation5]  }
  0x36   : > { %361 = vperm.xlu0 %1141, %v253_v2   ;;  %585 = vperm.xlu1 %1143, %v253_v2   ;;  %v271_v14 = vrot.slane %v1460_v11, %v270_v9  ;;  %v275_v15 = vrot.slane %v1460_v11, %v274_v10  ;;  %v279_v21 = vrot.slane %v1463_v12, %v270_v9  ;;  %s1214_s12 = sshll.u32 %s1327_s27, 4  ;;  %s1215_s12 = int_to_ptr.vmem [resolvable:$false] %s1214_s12 }
  0x37   : > { %v283_v22 = vrot.slane %v1463_v12, %v274_v10  ;;  %v287_v23 = vrot.slane %v1466_v13, %v270_v9  ;;  %v291_v24 = vrot.slane %v1466_v13, %v274_v10  ;;  %v295_v25 = vrot.slane %v1471_v16, %v270_v9  ;;  %p1212_p11 = pnand %p1211_p8, %p1405_p9  ;;  %s1216_s13 = scalar_lea.vmem %s1215_s12, 2048 }
  0x38   : > { %v299_v26 = vrot.slane %v1471_v16, %v274_v10  ;;  %v1479_v27 = vrot.slane %v271_v14, %v270_v9  ;;  %v1481_v28 = vrot.slane %v275_v15, %v270_v9  ;;  %v367_v29 = vrot.slane %v1460_v11, %v366_v17  ;;  %p1217_p0 = scmp.lt.s32.totalorder %s1798_s24, %s1215_s12  ;;  %p1218_p1 = scmp.lt.s32.totalorder %s1216_s13, %s1210_s11 }
  0x39   : > { %v371_v30 = vrot.slane %v1460_v11, %v370_v18  ;;  %v375_v31 = vrot.slane %v1463_v12, %v366_v17  ;;  %v379_v32 = vrot.slane %v1463_v12, %v370_v18  ;;  %v383_v33 = vrot.slane %v1466_v13, %v366_v17  ;;  %p1213_p12 = pneg %p1212_p11 }
  0x3a   : > { %1144 = vset.pattern.permute.xlu1 %v1323_v0  ;;  %1145 = vset.pattern.permute.xlu0 %v1323_v0  ;;  %v387_v34 = vrot.slane %v1466_v13, %v370_v18  ;;  %v391_v35 = vrot.slane %v1471_v16, %v366_v17  ;;  %v395_v36 = vrot.slane %v1471_v16, %v370_v18  ;;  %p1219_p2 = por %p1218_p1, %p1217_p0 }
  0x3b   : > { %695 = vperm.xlu1 %1144, %v692_v5   ;;  %256 = vperm.xlu0 %1145, %v252_v6   ;;  %v1491_v37 = vrot.slane %v279_v21, %v270_v9  ;;  %v1493_v38 = vrot.slane %v283_v22, %v270_v9  ;;  %v1495_v39 = vrot.slane %v287_v23, %v270_v9 }
  0x3c   : > { %v1497_v40 = vrot.slane %v291_v24, %v270_v9  ;;  %v1499_v41 = vrot.slane %v295_v25, %v270_v9  ;;  %v1501_v42 = vrot.slane %v299_v26, %v270_v9  ;;  %v1503_v45 = vrot.slane %v367_v29, %v366_v17  ;;  %p1220_p3 = pnand %p1219_p2, %p1213_p12 }
  0x3d   : > { %v1505_v46 = vrot.slane %v371_v30, %v366_v17  ;;  %v1507_v47 = vrot.slane %v375_v31, %v366_v17  ;;  %v1509_v48 = vrot.slane %v379_v32, %v366_v17  ;;  %v1511_v49 = vrot.slane %v383_v33, %v366_v17 }
  0x3e   : > { %v1513_v50 = vrot.slane %v387_v34, %v366_v17  ;;  %v1515_v51 = vrot.slane %v391_v35, %v366_v17  ;;  %v1517_v52 = vrot.slane %v395_v36, %v366_v17  ;;  %v479_v53 = vrot.slane %v1460_v11, %v478_v19 }
  0x3f   : > { %1146 = vset.pattern.permute.xlu1 %v1325_v3  ;;  %1148 = vset.pattern.permute.xlu0 %v1326_v4  ;;  %v483_v54 = vrot.slane %v1460_v11, %v482_v20  ;;  %v487_v55 = vrot.slane %v1463_v12, %v478_v19  ;;  %v491_v56 = vrot.slane %v1463_v12, %v482_v20 }
  0x40   : > { %357 = vperm.xlu1 %1146, %v252_v6   ;;  %581 = vperm.xlu0 %1148, %v252_v6   ;;  %v495_v57 = vrot.slane %v1466_v13, %v478_v19  ;;  %v499_v58 = vrot.slane %v1466_v13, %v482_v20  ;;  %v503_v59 = vrot.slane %v1471_v16, %v478_v19 }
  0x41   : > { %v507_v60 = vrot.slane %v1471_v16, %v482_v20  ;;  %v591_v61 = vrot.slane %v1460_v11, %v590_v43  ;;  %v595_v62 = vrot.slane %v1460_v11, %v594_v44  ;;  %v599_v63 = vrot.slane %v1463_v12, %v590_v43 }
  0x42   : > { %v611_v2 = vrot.slane %v1466_v13, %v594_v44  ;;  %v615_v3 = vrot.slane %v1471_v16, %v590_v43  ;;  %v619_v4 = vrot.slane %v1471_v16, %v594_v44  ;;  %v1535_v5 = vrot.slane %v479_v53, %v478_v19 }
  0x43   : > { %v1539_v7 = vrot.slane %v487_v55, %v478_v19  ;;  %v1541_v8 = vrot.slane %v491_v56, %v478_v19  ;;  %v1543_v9 = vrot.slane %v495_v57, %v478_v19  ;;  %v1545_v10 = vrot.slane %v499_v58, %v478_v19 }
  0x44   : > { %1147 = vset.pattern.permute.xlu1 %v1324_v1  ;;  %1149 = vset.pattern.permute.xlu0 %v1323_v0  ;;  %v603_v0 = vrot.slane %v1463_v12, %v594_v44  ;;  %v607_v1 = vrot.slane %v1466_v13, %v590_v43  ;;  %1898 = vst [vmem:[#allocation11_spill] sm:$0xff] %v1535_v5 }
  0x45   : > { %469 = vperm.xlu1 %1147, %v252_v6   ;;  %v1537_v6 = vrot.slane %v483_v54, %v478_v19  ;;  %1900 = vst [vmem:[#allocation13_spill] sm:$0xff] %v1539_v7  ;;  %1901 = vst [vmem:[#allocation14_spill] sm:$0xff] %v1541_v8  ;;  %v1547_v11 = vrot.slane %v503_v59, %v478_v19  ;;  %v1549_v12 = vrot.slane %v507_v60, %v478_v19 }
  0x46   : > { %1902 = vst [vmem:[#allocation15_spill] sm:$0xff] %v1543_v9  ;;  %1903 = vst [vmem:[#allocation16_spill] sm:$0xff] %v1545_v10  ;;  %v1551_v15 = vrot.slane %v591_v61, %v590_v43  ;;  %v1553_v16 = vrot.slane %v595_v62, %v590_v43  ;;  %v1555_v17 = vrot.slane %v599_v63, %v590_v43 }
  0x47   : > { %1899 = vst [vmem:[#allocation12_spill] sm:$0xff] %v1537_v6  ;;  %1904 = vst [vmem:[#allocation17_spill] sm:$0xff] %v1547_v11  ;;  %v1557_v18 = vrot.slane %v603_v0, %v590_v43  ;;  %v1559_v20 = vrot.slane %v607_v1, %v590_v43  ;;  %v1561_v21 = vrot.slane %v611_v2, %v590_v43 }
  0x48   : > { %1905 = vst [vmem:[#allocation18_spill] sm:$0xff] %v1549_v12  ;;  %v1563_v22 = vrot.slane %v615_v3, %v590_v43  ;;  %v1565_v23 = vrot.slane %v619_v4, %v590_v43 }
  0xac   : > { %v262_v13 = vpop.permute.xlu0 %261  ;;  %v474_v14 = vpop.permute.xlu1 %473 }
  0xad   : > { %v348_v19 = vmul.f32 %v1479_v27, %v262_v13  ;;  %v349_v24 = vmul.f32 %v1481_v28, %v262_v13  ;;  %v350_v25 = vmul.f32 %v1491_v37, %v262_v13  ;;  %v351_v26 = vmul.f32 %v1493_v38, %v262_v13 }
  0xae   : > { %v352_v29 = vmul.f32 %v1495_v39, %v262_v13  ;;  %v353_v30 = vmul.f32 %v1497_v40, %v262_v13  ;;  %v354_v31 = vmul.f32 %v1499_v41, %v262_v13  ;;  %v355_v32 = vmul.f32 %v1501_v42, %v262_v13 }
  0xaf   : > { %v556_v33 = vmul.f32 %v1535_v5, %v474_v14  ;;  %v557_v34 = vmul.f32 %v1537_v6, %v474_v14  ;;  %v558_v35 = vmul.f32 %v1539_v7, %v474_v14  ;;  %v559_v36 = vmul.f32 %v1541_v8, %v474_v14 }
  0xb0   : > { %v560_v53 = vmul.f32 %v1543_v9, %v474_v14  ;;  %v561_v54 = vmul.f32 %v1545_v10, %v474_v14  ;;  %v562_v55 = vmul.f32 %v1547_v11, %v474_v14  ;;  %v563_v56 = vmul.f32 %v1549_v12, %v474_v14 }
  0xb1   : > { %v362_v43 = vpop.permute.xlu0 %361  ;;  %v586_v44 = vpop.permute.xlu1 %585 }
  0xb2   : > { %v444_v57 = vmul.f32 %v1503_v45, %v362_v43  ;;  %v445_v58 = vmul.f32 %v1505_v46, %v362_v43  ;;  %v446_v59 = vmul.f32 %v1507_v47, %v362_v43  ;;  %v447_v60 = vmul.f32 %v1509_v48, %v362_v43 }
  0xb3   : > { %v448_v61 = vmul.f32 %v1511_v49, %v362_v43  ;;  %v449_v62 = vmul.f32 %v1513_v50, %v362_v43  ;;  %v450_v63 = vmul.f32 %v1515_v51, %v362_v43  ;;  %v451_v0 = vmul.f32 %v1517_v52, %v362_v43 }
  0xb4   : > { %v460_v1 = vadd.f32 %v444_v57, %v348_v19  ;;  %v461_v2 = vadd.f32 %v445_v58, %v349_v24  ;;  %v462_v3 = vadd.f32 %v446_v59, %v350_v25  ;;  %v463_v4 = vadd.f32 %v447_v60, %v351_v26 }
  0xb5   : > { %v464_v13 = vadd.f32 %v448_v61, %v352_v29  ;;  %v465_v14 = vadd.f32 %v449_v62, %v353_v30  ;;  %v466_v12 = vadd.f32 %v450_v63, %v354_v31  ;;  %v467_v11 = vadd.f32 %v451_v0, %v355_v32  ;;  %v1906_v0 = vld [vmem:[#allocation11_spill] sm:$0xff] }
  0xb6   : > { %v257_v10 = vpop.permute.xlu0 %256  ;;  %v1591_v9 = vadd.f32 %v556_v33, %v460_v1  ;;  %v1593_v8 = vadd.f32 %v557_v34, %v461_v2  ;;  %v1595_v7 = vadd.f32 %v558_v35, %v462_v3  ;;  %v1597_v6 = vadd.f32 %v559_v36, %v463_v4  ;;  %v1599_v5 = vpop.permute.xlu1 %695  ;;  %v1907_v1 = vld [vmem:[#allocation12_spill] sm:$0xff]  ;;  %v1908_v3 = vld [vmem:[#allocation13_spill] sm:$0xff] }
  0xb7   : > { %v340_v19 = vmul.f32 %v1479_v27, %v257_v10  ;;  %v341_v24 = vmul.f32 %v1481_v28, %v257_v10  ;;  %v342_v25 = vmul.f32 %v1491_v37, %v257_v10  ;;  %v343_v26 = vmul.f32 %v1493_v38, %v257_v10 }
  0xb8   : > { %v344_v29 = vmul.f32 %v1495_v39, %v257_v10  ;;  %v345_v30 = vmul.f32 %v1497_v40, %v257_v10  ;;  %v346_v31 = vmul.f32 %v1499_v41, %v257_v10  ;;  %v347_v32 = vmul.f32 %v1501_v42, %v257_v10 }
  0xb9   : > { %v1609_v33 = vadd.f32 %v560_v53, %v464_v13  ;;  %v1611_v34 = vadd.f32 %v561_v54, %v465_v14  ;;  %v1613_v35 = vadd.f32 %v562_v55, %v466_v12  ;;  %v1615_v27 = vadd.f32 %v563_v56, %v467_v11  ;;  %v1909_v13 = vld [vmem:[#allocation14_spill] sm:$0xff] }
  0xba   : > { %v668_v28 = vmul.f32 %v1551_v15, %v586_v44  ;;  %v669_v37 = vmul.f32 %v1553_v16, %v586_v44  ;;  %v670_v38 = vmul.f32 %v1555_v17, %v586_v44  ;;  %v671_v39 = vmul.f32 %v1557_v18, %v586_v44 }
  0xbb   : > { %v358_v40 = vpop.permute.xlu1 %357  ;;  %v672_v41 = vmul.f32 %v1559_v20, %v586_v44  ;;  %v673_v42 = vmul.f32 %v1561_v21, %v586_v44  ;;  %v674_v10 = vmul.f32 %v1563_v22, %v586_v44  ;;  %v675_v12 = vmul.f32 %v1565_v23, %v586_v44  ;;  %v582_v58 = vpop.permute.xlu0 %581 }
  0xbc   : > { %v436_v11 = vmul.f32 %v1503_v45, %v358_v40  ;;  %v437_v36 = vmul.f32 %v1505_v46, %v358_v40  ;;  %v438_v43 = vmul.f32 %v1507_v47, %v358_v40  ;;  %v439_v53 = vmul.f32 %v1509_v48, %v358_v40 }
  0xbd   : > { %v440_v54 = vmul.f32 %v1511_v49, %v358_v40  ;;  %v441_v55 = vmul.f32 %v1513_v50, %v358_v40  ;;  %v442_v56 = vmul.f32 %v1515_v51, %v358_v40  ;;  %v443_v57 = vmul.f32 %v1517_v52, %v358_v40 }
  0xbe   : > { %v452_v59 = vadd.f32 %v436_v11, %v340_v19  ;;  %v453_v60 = vadd.f32 %v437_v36, %v341_v24  ;;  %v454_v44 = vadd.f32 %v438_v43, %v342_v25  ;;  %v455_v61 = vadd.f32 %v439_v53, %v343_v26  ;;  %v1910_v19 = vld [vmem:[#allocation15_spill] sm:$0xff]  ;;  %v1911_v25 = vld [vmem:[#allocation16_spill] sm:$0xff] }
  0xbf   : > { %v456_v45 = vadd.f32 %v440_v54, %v344_v29  ;;  %v457_v62 = vadd.f32 %v441_v55, %v345_v30  ;;  %v458_v46 = vadd.f32 %v442_v56, %v346_v31  ;;  %v459_v63 = vadd.f32 %v443_v57, %v347_v32  ;;  %v1912_v29 = vld [vmem:[#allocation17_spill] sm:$0xff]  ;;  %v1913_v30 = vld [vmem:[#allocation18_spill] sm:$0xff] }
  0xc0   : > { %v470_v47 = vpop.permute.xlu1 %469  ;;  %v660_v48 = vmul.f32 %v1551_v15, %v582_v58  ;;  %v661_v49 = vmul.f32 %v1553_v16, %v582_v58  ;;  %v662_v50 = vmul.f32 %v1555_v17, %v582_v58  ;;  %v663_v51 = vmul.f32 %v1557_v18, %v582_v58 }
  0xc1   : > { %v548_v52 = vmul.f32 %v1906_v0, %v470_v47  ;;  %v549_v2 = vmul.f32 %v1907_v1, %v470_v47  ;;  %v550_v4 = vmul.f32 %v1908_v3, %v470_v47  ;;  %v551_v14 = vmul.f32 %v1909_v13, %v470_v47 }
  0xc2   : > { %v552_v24 = vmul.f32 %v1910_v19, %v470_v47  ;;  %v553_v26 = vmul.f32 %v1911_v25, %v470_v47  ;;  %v554_v15 = vmul.f32 %v1912_v29, %v470_v47  ;;  %v555_v16 = vmul.f32 %v1913_v30, %v470_v47 }
  0xc3   : > { %v564_v31 = vadd.f32 %v548_v52, %v452_v59  ;;  %v565_v17 = vadd.f32 %v549_v2, %v453_v60  ;;  %v566_v32 = vadd.f32 %v550_v4, %v454_v44  ;;  %v567_v18 = vadd.f32 %v551_v14, %v455_v61 }
  0xc4   : > { %v568_v40 = vadd.f32 %v552_v24, %v456_v45  ;;  %v569_v11 = vadd.f32 %v553_v26, %v457_v62  ;;  %v570_v36 = vadd.f32 %v554_v15, %v458_v46  ;;  %v571_v43 = vadd.f32 %v555_v16, %v459_v63 }
  0xc5   : > { %v664_v53 = vmul.f32 %v1559_v20, %v582_v58  ;;  %v665_v54 = vmul.f32 %v1561_v21, %v582_v58  ;;  %v666_v55 = vmul.f32 %v1563_v22, %v582_v58  ;;  %v667_v56 = vmul.f32 %v1565_v23, %v582_v58 }
  0xc6   : > { %v1649_v57 = vadd.f32 %v660_v48, %v564_v31  ;;  %v1651_v0 = vadd.f32 %v661_v49, %v565_v17  ;;  %v1653_v59 = vadd.f32 %v662_v50, %v566_v32  ;;  %v1655_v60 = vadd.f32 %v663_v51, %v567_v18 }
  0xc7   : > { %v1657_v44 = vadd.f32 %v664_v53, %v568_v40  ;;  %v1659_v61 = vadd.f32 %v665_v54, %v569_v11  ;;  %v1661_v45 = vadd.f32 %v666_v55, %v570_v36  ;;  %v1663_v20 = vadd.f32 %v667_v56, %v571_v43 }
  0xc8   : > { %v684_v21 = vadd.f32 %v668_v28, %v1591_v9  ;;  %v685_v22 = vadd.f32 %v669_v37, %v1593_v8  ;;  %v686_v23 = vadd.f32 %v670_v38, %v1595_v7  ;;  %v687_v58 = vadd.f32 %v671_v39, %v1597_v6 }
  0xc9   : > { %v688_v62 = vadd.f32 %v672_v41, %v1609_v33  ;;  %v689_v46 = vadd.f32 %v673_v42, %v1611_v34  ;;  %v690_v63 = vadd.f32 %v674_v10, %v1613_v35  ;;  %v691_v47 = vadd.f32 %v675_v12, %v1615_v27 }
  0xca   : > { %v698_v48 = vadd.f32 %v1599_v5, %v684_v21  ;;  %v699_v49 = vadd.f32 %v1599_v5, %v685_v22  ;;  %v700_v9 = vadd.f32 %v1599_v5, %v686_v23  ;;  %v701_v8 = vadd.f32 %v1599_v5, %v687_v58 }
  0xcb   : > { %v702_v7 = vadd.f32 %v1599_v5, %v688_v62  ;;  %v703_v6 = vadd.f32 %v1599_v5, %v689_v46  ;;  %v704_v33 = vadd.f32 %v1599_v5, %v690_v63  ;;  %v705_v34 = vadd.f32 %v1599_v5, %v691_v47 }
  0xcc   : > { %vm706_vm0 = vcmp.ge.f32.partialorder %v698_v48, 0.0  ;;  %vm707_vm1 = vcmp.ge.f32.partialorder %v699_v49, 0.0  ;;  %vm708_vm2 = vcmp.ge.f32.partialorder %v700_v9, 0.0  ;;  %vm709_vm3 = vcmp.ge.f32.partialorder %v701_v8, 0.0 }
  0xcd   : > { %vm710_vm4 = vcmp.ge.f32.partialorder %v702_v7, 0.0  ;;  %vm711_vm5 = vcmp.ge.f32.partialorder %v703_v6, 0.0  ;;  %vm712_vm6 = vcmp.ge.f32.partialorder %v704_v33, 0.0  ;;  %vm713_vm7 = vcmp.ge.f32.partialorder %v705_v34, 0.0 }
  0xce   : > { %v714_v35 = vmul.f32 0.01, %v698_v48  ;;  %v715_v27 = vmul.f32 0.01, %v699_v49  ;;  %v716_v28 = vmul.f32 0.01, %v700_v9 }
  0xcf   : > { %v717_v37 = vmul.f32 0.01, %v701_v8  ;;  %v718_v38 = vmul.f32 0.01, %v702_v7  ;;  %v719_v39 = vmul.f32 0.01, %v703_v6 }
  0xd0   : > { %v720_v41 = vmul.f32 0.01, %v704_v33  ;;  %v721_v42 = vmul.f32 0.01, %v705_v34  ;;  %v1682_v10 = vsel %vm706_vm0, %v698_v48, %v714_v35  ;;  %v1685_v5 = vsel %vm707_vm1, %v699_v49, %v715_v27 }
  0xd1   : > { %v1688_v12 = vsel %vm708_vm2, %v700_v9, %v716_v28  ;;  %v1691_v50 = vsel %vm709_vm3, %v701_v8, %v717_v37  ;;  %v1694_v51 = vsel %vm710_vm4, %v702_v7, %v718_v38  ;;  %v1697_v52 = vsel %vm711_vm5, %v703_v6, %v719_v39 }
  0xd2   : > { %v1700_v1 = vsel %vm712_vm6, %v704_v33, %v720_v41  ;;  %v1703_v2 = vsel %vm713_vm7, %v705_v34, %v721_v42  ;;  %v730_v3 = vrot.slane %v1682_v10, 4  ;;  %v736_v4 = vrot.slane %v1685_v5, 4 }
  0xd3   : > { %v742_v13 = vrot.slane %v1688_v12, 4  ;;  %v748_v14 = vrot.slane %v1691_v50, 4  ;;  %v754_v19 = vrot.slane %v1694_v51, 4  ;;  %v760_v24 = vrot.slane %v1697_v52, 4 }
  0xd4   : > { %v731_v25 = vmax.f32 %v1682_v10, %v730_v3  ;;  %v737_v26 = vmax.f32 %v1685_v5, %v736_v4  ;;  %v766_v29 = vrot.slane %v1700_v1, 4  ;;  %v772_v15 = vrot.slane %v1703_v2, 4 }
  0xd5   : > { %v743_v30 = vmax.f32 %v1688_v12, %v742_v13  ;;  %v749_v16 = vmax.f32 %v1691_v50, %v748_v14  ;;  %v755_v31 = vmax.f32 %v1694_v51, %v754_v19  ;;  %v761_v17 = vmax.f32 %v1697_v52, %v760_v24 }
  0xd6   : > { %v732_v32 = vrot.slane %v731_v25, 2  ;;  %v738_v18 = vrot.slane %v737_v26, 2  ;;  %v767_v40 = vmax.f32 %v1700_v1, %v766_v29  ;;  %v773_v11 = vmax.f32 %v1703_v2, %v772_v15 }
  0xd7   : > { %v744_v36 = vrot.slane %v743_v30, 2  ;;  %v750_v43 = vrot.slane %v749_v16, 2  ;;  %v756_v53 = vrot.slane %v755_v31, 2  ;;  %v762_v54 = vrot.slane %v761_v17, 2 }
  0xd8   : > { %v733_v55 = vmax.f32 %v731_v25, %v732_v32  ;;  %v739_v56 = vmax.f32 %v737_v26, %v738_v18  ;;  %v768_v21 = vrot.slane %v767_v40, 2  ;;  %v774_v22 = vrot.slane %v773_v11, 2 }
  0xd9   : > { %v745_v23 = vmax.f32 %v743_v30, %v744_v36  ;;  %v751_v58 = vmax.f32 %v749_v16, %v750_v43  ;;  %v757_v62 = vmax.f32 %v755_v31, %v756_v53  ;;  %v763_v46 = vmax.f32 %v761_v17, %v762_v54 }
  0xda   : > { %v734_v63 = vrot.slane %v733_v55, 1  ;;  %v740_v47 = vrot.slane %v739_v56, 1  ;;  %v769_v48 = vmax.f32 %v767_v40, %v768_v21  ;;  %v775_v49 = vmax.f32 %v773_v11, %v774_v22 }
  0xdb   : > { %v746_v9 = vrot.slane %v745_v23, 1  ;;  %v752_v8 = vrot.slane %v751_v58, 1  ;;  %v758_v7 = vrot.slane %v757_v62, 1  ;;  %v764_v6 = vrot.slane %v763_v46, 1 }
  0xdc   : > { %v735_v33 = vmax.f32 %v733_v55, %v734_v63  ;;  %v741_v34 = vmax.f32 %v739_v56, %v740_v47  ;;  %v770_v35 = vrot.slane %v769_v48, 1  ;;  %v776_v27 = vrot.slane %v775_v49, 1 }
  0xdd   : > { %v747_v28 = vmax.f32 %v745_v23, %v746_v9  ;;  %v753_v37 = vmax.f32 %v751_v58, %v752_v8  ;;  %v759_v38 = vmax.f32 %v757_v62, %v758_v7  ;;  %v765_v39 = vmax.f32 %v763_v46, %v764_v6 }
  0xde   : > { %v771_v41 = vmax.f32 %v769_v48, %v770_v35  ;;  %v777_v42 = vmax.f32 %v775_v49, %v776_v27  ;;  %v778_v3 = vsub.f32 %v1682_v10, %v735_v33  ;;  %v779_v4 = vsub.f32 %v1685_v5, %v741_v34 }
  0xdf   : > { %v780_v13 = vsub.f32 %v1688_v12, %v747_v28  ;;  %v781_v14 = vsub.f32 %v1691_v50, %v753_v37  ;;  %v782_v19 = vsub.f32 %v1694_v51, %v759_v38  ;;  %v783_v24 = vsub.f32 %v1697_v52, %v765_v39 }
  0xe0   : > { %v784_v25 = vsub.f32 %v1700_v1, %v771_v41  ;;  %v786_v26 = vmul.f32 1.442695, %v778_v3  ;;  %v788_v29 = vmul.f32 1.442695, %v779_v4  ;;  %v785_v15 = vsub.f32 %v1703_v2, %v777_v42 }
  0xe1   : > { %v790_v30 = vmul.f32 1.442695, %v780_v13  ;;  %v792_v16 = vmul.f32 1.442695, %v781_v14  ;;  %v794_v10 = vmul.f32 1.442695, %v782_v19 }
  0xe2   : > { %1150 = vpow2.f32 %v786_v26  ;;  %v796_v5 = vmul.f32 1.442695, %v783_v24  ;;  %v798_v12 = vmul.f32 1.442695, %v784_v25  ;;  %v800_v50 = vmul.f32 1.442695, %v785_v15 }
  0xe3   : > { %1152 = vpow2.f32 %v788_v29 }
  0xe4   : > { %1154 = vpow2.f32 %v790_v30 }
  0xe5   : > { %1156 = vpow2.f32 %v792_v16 }
  0xe6   : > { %1158 = vpow2.f32 %v794_v10 }
  0xe7   : > { %1160 = vpow2.f32 %v796_v5 }
  0xe8   : > { %1162 = vpow2.f32 %v798_v12 }
  0xe9   : > { %1164 = vpow2.f32 %v800_v50 }
  0xef   : > { %v1729_v51 = vpop.eup %1150 }
  0xf0   : > { %v1731_v52 = vpop.eup %1152  ;;  %v802_v1 = vrot.slane %v1729_v51, 4 }
  0xf1   : > { %v1734_v2 = vpop.eup %1154  ;;  %v808_v31 = vrot.slane %v1731_v52, 4 }
  0xf2   : > { %v1737_v17 = vpop.eup %1156  ;;  %v803_v32 = vadd.f32 %v1729_v51, %v802_v1  ;;  %v814_v18 = vrot.slane %v1734_v2, 4 }
  0xf3   : > { %v1741_v40 = vpop.eup %1158  ;;  %v809_v11 = vadd.f32 %v1731_v52, %v808_v31  ;;  %v820_v36 = vrot.slane %v1737_v17, 4 }
  0xf4   : > { %v1745_v43 = vpop.eup %1160  ;;  %v804_v53 = vrot.slane %v803_v32, 2  ;;  %v815_v54 = vadd.f32 %v1734_v2, %v814_v18  ;;  %v826_v55 = vrot.slane %v1741_v40, 4 }
  0xf5   : > { %v1749_v56 = vpop.eup %1162  ;;  %v810_v21 = vrot.slane %v809_v11, 2  ;;  %v821_v22 = vadd.f32 %v1737_v17, %v820_v36  ;;  %v832_v23 = vrot.slane %v1745_v43, 4 }
  0xf6   : > { %v1753_v58 = vpop.eup %1164  ;;  %v805_v62 = vadd.f32 %v804_v53, %v803_v32  ;;  %v816_v46 = vrot.slane %v815_v54, 2  ;;  %v827_v63 = vadd.f32 %v1741_v40, %v826_v55  ;;  %v838_v47 = vrot.slane %v1749_v56, 4 }
  0xf7   : > { %v811_v48 = vadd.f32 %v810_v21, %v809_v11  ;;  %v822_v49 = vrot.slane %v821_v22, 2  ;;  %v833_v9 = vadd.f32 %v1745_v43, %v832_v23  ;;  %v844_v8 = vrot.slane %v1753_v58, 4 }
  0xf8   : > { %v806_v7 = vrot.slane %v805_v62, 1  ;;  %v817_v6 = vadd.f32 %v816_v46, %v815_v54  ;;  %v828_v33 = vrot.slane %v827_v63, 2  ;;  %v839_v34 = vadd.f32 %v1749_v56, %v838_v47 }
  0xf9   : > { %v812_v35 = vrot.slane %v811_v48, 1  ;;  %v823_v27 = vadd.f32 %v822_v49, %v821_v22  ;;  %v834_v28 = vrot.slane %v833_v9, 2  ;;  %v845_v37 = vadd.f32 %v1753_v58, %v844_v8 }
  0xfa   : > { %v807_v38 = vadd.f32 %v806_v7, %v805_v62  ;;  %v818_v39 = vrot.slane %v817_v6, 1  ;;  %v829_v41 = vadd.f32 %v828_v33, %v827_v63  ;;  %v840_v42 = vrot.slane %v839_v34, 2 }
  0xfb   : > { %v813_v3 = vadd.f32 %v812_v35, %v811_v48  ;;  %v824_v4 = vrot.slane %v823_v27, 1  ;;  %v835_v13 = vadd.f32 %v834_v28, %v833_v9  ;;  %v846_v14 = vrot.slane %v845_v37, 2 }
  0xfc   : > { %v819_v19 = vadd.f32 %v818_v39, %v817_v6  ;;  %v830_v24 = vrot.slane %v829_v41, 1  ;;  %v841_v25 = vadd.f32 %v840_v42, %v839_v34  ;;  %1166 = vrcp.f32 %v807_v38 }
  0xfd   : > { %v825_v26 = vadd.f32 %v824_v4, %v823_v27  ;;  %v836_v29 = vrot.slane %v835_v13, 1  ;;  %v847_v15 = vadd.f32 %v846_v14, %v845_v37  ;;  %1168 = vrcp.f32 %v813_v3 }
  0xfe   : > { %v831_v30 = vadd.f32 %v830_v24, %v829_v41  ;;  %v842_v16 = vrot.slane %v841_v25, 1  ;;  %1170 = vrcp.f32 %v819_v19 }
  0xff   : > { %v837_v10 = vadd.f32 %v836_v29, %v835_v13  ;;  %v848_v5 = vrot.slane %v847_v15, 1  ;;  %1172 = vrcp.f32 %v825_v26 }
 0x100   : > { %v843_v12 = vadd.f32 %v842_v16, %v841_v25  ;;  %1174 = vrcp.f32 %v831_v30 }
 0x101   : > { %v849_v50 = vadd.f32 %v848_v5, %v847_v15  ;;  %1176 = vrcp.f32 %v837_v10 }
 0x102   : > { %1178 = vrcp.f32 %v843_v12 }
 0x103   : > { %1180 = vrcp.f32 %v849_v50 }
 0x109   : > { %v1167_v1 = vpop.eup %1166 }
 0x10a   : > { %v1169_v31 = vpop.eup %1168  ;;  %v858_v32 = vmul.f32 %v1167_v1, %v1729_v51 }
 0x10b   : > { %v1171_v18 = vpop.eup %1170  ;;  %v859_v11 = vmul.f32 %v1169_v31, %v1731_v52 }
 0x10c   : > { %v1173_v36 = vpop.eup %1172  ;;  %v860_v53 = vmul.f32 %v1171_v18, %v1734_v2  ;;  %v866_v54 = vmul.f32 %v858_v32, %v1649_v57  ;;  %874 = vst [vmem:[%s1766_s14] sm:$0xff] %v858_v32 }
 0x10d   : > { %v1175_v55 = vpop.eup %1174  ;;  %v861_v51 = vmul.f32 %v1173_v36, %v1737_v17  ;;  %v867_v21 = vmul.f32 %v859_v11, %v1651_v0  ;;  %875 = vst [vmem:[%s1766_s14 + $0x8] sm:$0xff] %v859_v11 }
 0x10e   : > { %v1177_v52 = vpop.eup %1176  ;;  %v862_v2 = vmul.f32 %v1175_v55, %v1741_v40  ;;  %v868_v57 = vmul.f32 %v860_v53, %v1653_v59  ;;  %876 = vst [vmem:[%s1766_s14 + $0x10] sm:$0xff] %v860_v53  ;;  %882 = vst [vmem:[%s1775_s21] sm:$0xff] %v866_v54 }
 0x10f   : > { %v1179_v0 = vpop.eup %1178  ;;  %v863_v17 = vmul.f32 %v1177_v52, %v1745_v43  ;;  %v869_v22 = vmul.f32 %v861_v51, %v1655_v60  ;;  %877 = vst [vmem:[%s1766_s14 + $0x18] sm:$0xff] %v861_v51  ;;  %883 = vst [vmem:[%s1775_s21 + $0x8] sm:$0xff] %v867_v21 }
 0x110   : > { %v1181_v59 = vpop.eup %1180  ;;  %v864_v40 = vmul.f32 %v1179_v0, %v1749_v56  ;;  %v870_v23 = vmul.f32 %v862_v2, %v1657_v44  ;;  %878 = vst [vmem:[%s1766_s14 + $0x20] sm:$0xff] %v862_v2  ;;  %884 = vst [vmem:[%s1775_s21 + $0x10] sm:$0xff] %v868_v57 }
 0x111   : > { %v865_v43 = vmul.f32 %v1181_v59, %v1753_v58  ;;  %v871_v60 = vmul.f32 %v863_v17, %v1659_v61  ;;  %879 = vst [vmem:[%s1766_s14 + $0x28] sm:$0xff] %v863_v17  ;;  %885 = vst [vmem:[%s1775_s21 + $0x18] sm:$0xff] %v869_v22 }
 0x112   : > { %v872_v44 = vmul.f32 %v864_v40, %v1661_v45  ;;  %880 = vst [vmem:[%s1766_s14 + $0x30] sm:$0xff] %v864_v40  ;;  %886 = vst [vmem:[%s1775_s21 + $0x20] sm:$0xff] %v870_v23 }
 0x113   : > { %v873_v56 = vmul.f32 %v865_v43, %v1663_v20  ;;  %881 = vst [vmem:[%s1766_s14 + $0x38] sm:$0xff] %v865_v43  ;;  %887 = vst [vmem:[%s1775_s21 + $0x28] sm:$0xff] %v871_v60 }
 0x114   : > { %888 = vst [vmem:[%s1775_s21 + $0x30] sm:$0xff] %v872_v44 }
 0x115   : > { %1223 = shalt.err (!%p1220_p3)
}
 0x116   : > { %s1224_s14 = scalar_lea.hbm %s1796_s6, 1024  ;;  %s1228_s5 = scalar_lea.hbm %s1883_s3, 2048 }
 0x117   : > { %p1225_p5 = scmp.ne.s32.totalorder %s1796_s6, %s1224_s14  ;;  %p1229_p10 = scmp.lt.s32.totalorder %s1796_s6, %s1883_s3 }
 0x118   : > { %p1230_p4 = scmp.lt.s32.totalorder %s1228_s5, %s1224_s14 }
 0x119   : > { %p1226_p6 = pnand %p1225_p5, %p1405_p9 }
 0x11a   : > { %p1231_p13 = por %p1230_p4, %p1229_p10 }
 0x11b   : > { %p1227_p7 = pneg %p1226_p6 }
 0x11d   : > { %p1232_p8 = pnand %p1231_p13, %p1227_p7 }
 0x11f   : > { %1235 = shalt.err (!%p1232_p8)
}
 0x120   : > { %1071 = dma.vmem_to_hbm [thread:$0]  (%p1405_p9), %s1798_s24, 1024, %s1796_s6, %s891_s10   ;;  %889 = vst [vmem:[%s1775_s21 + $0x38] sm:$0xff] %v873_v56 }
 0x121   : > { %s896_s11 = scalar_lea.sflag [#allocation7], %s1440_s25  ;;  %s1236_s27 = scalar_lea.vmem %s1811_s18, 1024 }
 0x122   : > { %p1237_p11 = scmp.ne.s32.totalorder %s1811_s18, %s1236_s27  ;;  %s1328_s12 = smov [#allocation6]  }
 0x123   : > { %s1240_s13 = sshll.u32 %s1328_s12, 4  ;;  %s1241_s13 = int_to_ptr.vmem [resolvable:$false] %s1240_s13 }
 0x124   : > { %p1238_p12 = pnand %p1237_p11, %p1405_p9  ;;  %s1242_s14 = scalar_lea.vmem %s1241_s13, 2048 }
 0x125   : > { %p1243_p1 = scmp.lt.s32.totalorder %s1811_s18, %s1241_s13  ;;  %p1244_p2 = scmp.lt.s32.totalorder %s1242_s14, %s1236_s27 }
 0x126   : > { %p1239_p0 = pneg %p1238_p12 }
 0x127   : > { %p1245_p3 = por %p1244_p2, %p1243_p1 }
 0x129   : > { %p1246_p5 = pnand %p1245_p3, %p1239_p0 }
 0x12b   : > { %1249 = shalt.err (!%p1246_p5)
}
 0x12c   : > { %s1250_s21 = scalar_lea.hbm %s1809_s9, 1024  ;;  %s1254_s6 = scalar_lea.hbm %s1884_s4, 2048 }
 0x12d   : > { %p1251_p6 = scmp.ne.s32.totalorder %s1809_s9, %s1250_s21  ;;  %p1255_p4 = scmp.lt.s32.totalorder %s1809_s9, %s1884_s4 }
 0x12e   : > { %p1256_p13 = scmp.lt.s32.totalorder %s1254_s6, %s1250_s21 }
 0x12f   : > { %p1252_p7 = pnand %p1251_p6, %p1405_p9 }
 0x130   : > { %p1257_p8 = por %p1256_p13, %p1255_p4 }
 0x131   : > { %p1253_p10 = pneg %p1252_p7 }
 0x133   : > { %p1258_p11 = pnand %p1257_p8, %p1253_p10 }
 0x135   : > { %1261 = shalt.err (!%p1258_p11)
}
 0x136   : > { %1072 = dma.vmem_to_hbm [thread:$0]  (%p1405_p9), %s1811_s18, 1024, %s1809_s9, %s896_s11  }
 0x137 PF: > { %s940_s26 = sand.u32 1, %s1300_s15   ;;  %p1914_p12 = scmp.ne.s32.totalorder %s1896_s30, 0 }
 0x138   : > { %p1915_p0 = scmp.ge.s32.totalorder %s1320_s20, 2  ;;  %s941_s5 = scalar_lea.sflag [#allocation4], %s940_s26 }
 0x13a   : > { %p1080_p1 = pnand %p1915_p0, %p1914_p12 }
 0x13c   : > { %p1081_p2 = pneg %p1080_p1 }
 0x13e   : > { %1291 = dma.done.wait (%p1081_p2), %s941_s5, 1024  }
 0x13f   : > { %1293 = vsyncadd (%p1081_p2), %s941_s5, 4294966272  ;;  %s950_s7 = scalar_lea.sflag [#allocation7], %s940_s26 }
 0x140   : > { %1295 = dma.done.wait (%p1081_p2), %s950_s7, 1024  }
 0x141   : > { %1297 = vsyncadd (%p1081_p2), %s950_s7, 4294966272  ;;  %s24_s20 = sadd.s32 1, %s1320_s20   ;;  %s1916_s15 = smov %s1304_s16 }
 0x142   : > { %p21_p3 = scmp.ge.s32.totalorder %s24_s20, 4   ;;  %s1917_s16 = smov %s1308_s17 }
 0x143   : > { %s1918_s17 = smov %s1410_s29  ;;  %s1919_s18 = smov %s1316_s19 }
 0x144   : > { %s1920_s19 = smov %s1922_s23  ;;  %23 = sbr.rel (!%p21_p3) target bundleno = 8 (0x8), region = 94 }
 0x149   :  { %955 = vsyncpa [#allocation3], 1 }
 0x14a   :  { %957 = vsyncpa [#allocation3 + $0x1], 1 }
 0x14b   :  { %958 = vsyncpa [#allocation4], 1 }
 0x14c   :  { %960 = vsyncpa [#allocation4 + $0x1], 1 }
 0x14d   :  { %961 = vsyncpa [#allocation7], 1 }
 0x14e   :  { %963 = vsyncpa [#allocation7 + $0x1], 1 }

</bundles_post_ra>
